<compile_context>
chip_gen: v7x
topology: tpu7x:2x2x1
jax: 0.10.0
libtpu: 0.0.40
codegen_flags: <defaults>
</compile_context>

<pallas_src>
import jax
import jax.numpy as jnp
from jax.experimental import pallas as pl
from jax.experimental.pallas import tpu as pltpu

# -------------------- model hyper-params (small synthetic config) -----------
HIDDEN = 32          # stands in for 768
N_HEADS = 4
HEAD_DIM = HIDDEN // N_HEADS
FF_DIM = 4 * HIDDEN
N_LAYERS = 2
NUM_LABELS = 2
CLS_PAD = 128        # classifier output padded to a full lane width
LN_EPS = 1e-12
VOCAB = 64

# rows of the packed per-layer "small params" slab (L, 8, H)
_ROW_BO, _ROW_LN1G, _ROW_LN1B, _ROW_B2, _ROW_LN2G, _ROW_LN2B = range(6)
_SLAB_ROWS = 8       # padded to a full sublane tile

# order of the weight operands handed to the fused kernel
_WEIGHT_KEYS = ("wqkv", "bqkv", "wo", "w1", "b1", "w2", "small",
                "cls_w", "cls_b")
_LAYER_KEYS = ("wqkv", "bqkv", "wo", "w1", "b1", "w2", "small")


# -------------------- kernel helpers -----------------------------------------
def _layer_norm(x, gamma, beta):
    mu = jnp.mean(x, axis=-1, keepdims=True)
    var = jnp.mean((x - mu) ** 2, axis=-1, keepdims=True)
    return (x - mu) * jax.lax.rsqrt(var + LN_EPS) * gamma + beta


def _split_heads(x2d):
    """(S, NH*HD) -> (NH, S, HD) via static lane slices + leading-axis stack."""
    return jnp.stack(
        [x2d[:, n * HEAD_DIM:(n + 1) * HEAD_DIM] for n in range(N_HEADS)],
        axis=0)


def _merge_heads(x3d):
    """(NH, S, HD) -> (S, NH*HD) lane concatenation (head merge)."""
    return jnp.concatenate([x3d[n] for n in range(N_HEADS)], axis=-1)


# -------------------- Pallas kernel -------------------------------------------
def fused_block_kernel(tgt_ref,            # SMEM (B,) int32 (scalar prefetch)
                       x_ref,              # (1, S, H)   f32   block: batch b
                       wqkv_ref,           # (1, H, 3H)  bf16  block: layer l
                       bqkv_ref,           # (1, 1, 3H)  f32
                       wo_ref,             # (1, H, H)   bf16
                       w1_ref,             # (1, H, F)   bf16
                       b1_ref,             # (1, 1, F)   f32
                       w2_ref,             # (1, F, H)   bf16
                       small_ref,          # (1, 8, H)   f32   packed biases/LN
                       cls_w_ref,          # (H, 128)    f32   grid-invariant
                       cls_b_ref,          # (1, 128)    f32
                       o_ref,              # (1, 1, 128) f32   block: batch b
                       h_ref):             # VMEM scratch (B, S, H) f32
    """One encoder layer for one batch element (grid step = (layer, batch))."""
    l = pl.program_id(0)
    b = pl.program_id(1)
    scale = 1.0 / (HEAD_DIM ** 0.5)

    @pl.when(l == 0)
    def _():                               # load this batch element's input once
        h_ref[b] = x_ref[0]

    h = h_ref[b]                           # (S, H) f32 residual stream
    seq = h.shape[0]
    small = small_ref[0]                   # (8, H) f32

    # ---- self-attention: fused QKV projection (one lane-dense MXU matmul) ----
    qkv = jnp.dot(h.astype(jnp.bfloat16), wqkv_ref[0],
                  preferred_element_type=jnp.float32) + bqkv_ref[0]   # (S, 3H)
    q = _split_heads(qkv[:, :HIDDEN]).astype(jnp.bfloat16)            # (NH,S,HD)
    k = _split_heads(qkv[:, HIDDEN:2 * HIDDEN]).astype(jnp.bfloat16)
    v = _split_heads(qkv[:, 2 * HIDDEN:]).astype(jnp.bfloat16)

    # TODO(synk): no attention/padding mask (as in the reference usage here);
    # flash-style KV tiling needed at the real S=512 config.
    s = jnp.einsum("nqd,nkd->nqk", q, k,
                   preferred_element_type=jnp.float32) * scale        # (NH,S,S)
    s = s - jnp.max(s, axis=-1, keepdims=True)
    p = jnp.exp(s)
    p = p * pl.reciprocal(jnp.sum(p, axis=-1, keepdims=True), approx=True)
    ctx = jnp.einsum("nqk,nkd->nqd", p.astype(jnp.bfloat16), v,
                     preferred_element_type=jnp.float32)              # (NH,S,HD)

    # ---- head merge folded into ONE (S,H)@(H,H) output projection ------------
    attn = jnp.dot(_merge_heads(ctx).astype(jnp.bfloat16), wo_ref[0],
                   preferred_element_type=jnp.float32)
    attn = attn + small[_ROW_BO:_ROW_BO + 1]
    h1 = _layer_norm(h + attn,
                     small[_ROW_LN1G:_ROW_LN1G + 1],
                     small[_ROW_LN1B:_ROW_LN1B + 1])

    # ---- feed-forward ---------------------------------------------------------
    # TODO(synk): HF XLNet uses erf-based GELU; tanh approximation kept here.
    ff = jnp.dot(h1.astype(jnp.bfloat16), w1_ref[0],
                 preferred_element_type=jnp.float32) + b1_ref[0]
    ff = jax.nn.gelu(ff, approximate=True)
    ff = jnp.dot(ff.astype(jnp.bfloat16), w2_ref[0],
                 preferred_element_type=jnp.float32)
    ff = ff + small[_ROW_B2:_ROW_B2 + 1]
    h_new = _layer_norm(h1 + ff,
                        small[_ROW_LN2G:_ROW_LN2G + 1],
                        small[_ROW_LN2B:_ROW_LN2B + 1])
    h_ref[b] = h_new                       # carry residual stream to next layer

    # ---- epilogue: target-token select + classifier (last layer only) --------
    @pl.when(l == pl.num_programs(0) - 1)
    def _():
        t = tgt_ref[b]
        row_ids = jax.lax.broadcasted_iota(jnp.int32, (seq, 1), 0)
        pooled = jnp.sum(jnp.where(row_ids == t, h_new, 0.0),
                         axis=0, keepdims=True)                       # (1, H)
        # dropout is inference-mode identity; classifier into lane-padded out.
        o_ref[0] = (jnp.dot(pooled, cls_w_ref[...],
                            preferred_element_type=jnp.float32) + cls_b_ref[...])


def fused_forward(x, target_token_ids, ops):
    """x: (B, S, H) f32, target_token_ids: (B,) i32 -> (B, 1, CLS_PAD) f32."""
    B, S, H = x.shape
    weights = [ops[k] for k in _WEIGHT_KEYS]

    def layer_spec(w):       # streamed per layer: block index follows l
        nd = w.ndim
        return pl.BlockSpec((1,) + w.shape[1:],
                            lambda l, b, tgt, nd=nd: (l,) + (0,) * (nd - 1))

    def const_spec(w):       # grid-invariant (classifier params)
        nd = w.ndim
        return pl.BlockSpec(w.shape, lambda l, b, tgt, nd=nd: (0,) * nd)

    in_specs = [pl.BlockSpec((1, S, H), lambda l, b, tgt: (b, 0, 0))]
    for key in _WEIGHT_KEYS:
        in_specs.append(layer_spec(ops[key]) if key in _LAYER_KEYS
                        else const_spec(ops[key]))

    # NOTE: layer axis outer / batch axis inner -> each layer's weights are
    # fetched once per layer (not once per (layer, batch element)).
    # TODO(synk): mark the batch axis "parallel" for v7x dual-TensorCore use.
    return pl.pallas_call(
        fused_block_kernel,
        out_shape=jax.ShapeDtypeStruct((B, 1, CLS_PAD), jnp.float32),
        grid_spec=pltpu.PrefetchScalarGridSpec(
            num_scalar_prefetch=1,              # target_token_ids -> SMEM
            grid=(N_LAYERS, B),
            in_specs=in_specs,
            out_specs=pl.BlockSpec((1, 1, CLS_PAD), lambda l, b, tgt: (b, 0, 0)),
            scratch_shapes=[pltpu.VMEM((B, S, H), jnp.float32)]),
        compiler_params=pltpu.CompilerParams(
            dimension_semantics=("arbitrary", "arbitrary"),
            vmem_limit_bytes=48 * 1024 * 1024),
    )(target_token_ids, x, *weights)


# -------------------- parameter construction ---------------------------------
def init_params(key):
    keys = iter(jax.random.split(key, 32))

    def nrm(shape, std=0.02):
        return (std * jax.random.normal(next(keys), shape)).astype(jnp.float32)

    L, H, F = N_LAYERS, HIDDEN, FF_DIM
    params = {
        "word_emb": nrm((VOCAB, H)),
        "seg_emb": nrm((2, H)),
        "wq": nrm((L, H, H)), "wk": nrm((L, H, H)),
        "wv": nrm((L, H, H)), "wo": nrm((L, H, H)),
        "bq": jnp.zeros((L, 1, H), jnp.float32),
        "bk": jnp.zeros((L, 1, H), jnp.float32),
        "bv": jnp.zeros((L, 1, H), jnp.float32),
        "bo": jnp.zeros((L, 1, H), jnp.float32),
        "ln1_g": jnp.ones((L, 1, H), jnp.float32),
        "ln1_b": jnp.zeros((L, 1, H), jnp.float32),
        "w1": nrm((L, H, F)), "b1": jnp.zeros((L, 1, F), jnp.float32),
        "w2": nrm((L, F, H)), "b2": jnp.zeros((L, 1, H), jnp.float32),
        "ln2_g": jnp.ones((L, 1, H), jnp.float32),
        "ln2_b": jnp.zeros((L, 1, H), jnp.float32),
    }
    # classifier: nn.Linear(HIDDEN, NUM_LABELS), xavier_normal_ weight.
    xav_std = (2.0 / (H + NUM_LABELS)) ** 0.5
    cls_w = (xav_std * jax.random.normal(next(keys), (NUM_LABELS, H))
             ).astype(jnp.float32)
    bound = 1.0 / (H ** 0.5)
    cls_b = jax.random.uniform(next(keys), (1, NUM_LABELS),
                               minval=-bound, maxval=bound).astype(jnp.float32)
    params["cls_w"] = cls_w.T          # (H, NUM_LABELS) for x @ W
    params["cls_b"] = cls_b
    return params


def pack_for_kernel(p):
    """Fuse/pack weights into the kernel's operand layout (bf16 MXU operands)."""
    L, H = N_LAYERS, HIDDEN

    wqkv = jnp.concatenate([p["wq"], p["wk"], p["wv"]], axis=-1)   # (L, H, 3H)
    bqkv = jnp.concatenate([p["bq"], p["bk"], p["bv"]], axis=-1)   # (L, 1, 3H)
    small = jnp.concatenate(
        [p["bo"], p["ln1_g"], p["ln1_b"], p["b2"], p["ln2_g"], p["ln2_b"],
         jnp.zeros((L, _SLAB_ROWS - 6, H), jnp.float32)], axis=1)  # (L, 8, H)

    cls_w_pad = jnp.zeros((H, CLS_PAD), jnp.float32).at[:, :NUM_LABELS].set(
        p["cls_w"])
    cls_b_pad = jnp.zeros((1, CLS_PAD), jnp.float32).at[:, :NUM_LABELS].set(
        p["cls_b"])

    return {
        "wqkv": wqkv.astype(jnp.bfloat16),
        "bqkv": bqkv,
        "wo": p["wo"].astype(jnp.bfloat16),
        "w1": p["w1"].astype(jnp.bfloat16),
        "b1": p["b1"],
        "w2": p["w2"].astype(jnp.bfloat16),
        "small": small,
        "cls_w": cls_w_pad,
        "cls_b": cls_b_pad,
    }


# -------------------- full forward pass ---------------------------------------
def xlnet_for_wsd_forward(params, tokens_tensor, sentence_tensor,
                          target_token_ids):
    # Embedding lookup (glue, stays in XLA).
    h = (params["word_emb"][tokens_tensor]
         + params["seg_emb"][sentence_tensor]).astype(jnp.float32)

    # TODO(synk): XLNet's relative-position two-stream attention is replaced by
    # a standard transformer encoder stack (no pretrained checkpoint to load).
    ops = pack_for_kernel(params)
    logits_pad = fused_forward(h, target_token_ids.astype(jnp.int32), ops)

    # drop the lane padding; dropout is inference-mode identity; output_logits.
    return logits_pad[:, 0, :NUM_LABELS]


# -------------------- main -----------------------------------------------------
if __name__ == "__main__":
    key = jax.random.PRNGKey(0)
    k_par, k_tok, k_seg, k_tgt = jax.random.split(key, 4)

    B, S = 2, 8
    params = init_params(k_par)
    tokens_tensor = jax.random.randint(k_tok, (B, S), 0, VOCAB, dtype=jnp.int32)
    sentence_tensor = jax.random.randint(k_seg, (B, S), 0, 2, dtype=jnp.int32)
    target_token_ids = jax.random.randint(k_tgt, (B,), 0, S, dtype=jnp.int32)

    logits = xlnet_for_wsd_forward(params, tokens_tensor, sentence_tensor,
                                   target_token_ids)
    logits = jax.block_until_ready(logits)
    assert logits.shape == (B, NUM_LABELS)
    assert bool(jnp.all(jnp.isfinite(logits)))
    print("KERNEL_OK")
</pallas_src>

<mosaic_0001>
module attributes {stable_mosaic.version = 11 : i64} {
  func.func @fused_block_kernel(%arg0: i32, %arg1: i32, %arg2: memref<2xi32, #tpu.memory_space<smem>>, %arg3: memref<1x8x32xf32, #tpu.memory_space<vmem>>, %arg4: memref<1x32x96xbf16, #tpu.memory_space<vmem>>, %arg5: memref<1x1x96xf32, #tpu.memory_space<vmem>>, %arg6: memref<1x32x32xbf16, #tpu.memory_space<vmem>>, %arg7: memref<1x32x128xbf16, #tpu.memory_space<vmem>>, %arg8: memref<1x1x128xf32, #tpu.memory_space<vmem>>, %arg9: memref<1x128x32xbf16, #tpu.memory_space<vmem>>, %arg10: memref<1x8x32xf32, #tpu.memory_space<vmem>>, %arg11: memref<32x128xf32, #tpu.memory_space<vmem>>, %arg12: memref<1x128xf32, #tpu.memory_space<vmem>>, %arg13: memref<1x1x128xf32, #tpu.memory_space<vmem>>, %arg14: memref<2x8x32xf32, #tpu.memory_space<vmem>>) attributes {dimension_semantics = [#tpu.dimension_semantics<arbitrary>, #tpu.dimension_semantics<arbitrary>], iteration_bounds = array<i64: 2, 2>, scalar_prefetch = 1 : i64, scratch_operands = 1 : i64, tpu.core_type = #tpu.core_type<tc>, window_params = [{transform_indices = @transform_0, window_bounds = array<i64: 1, 8, 32>}, {transform_indices = @transform_1, window_bounds = array<i64: 1, 32, 96>}, {transform_indices = @transform_2, window_bounds = array<i64: 1, 1, 96>}, {transform_indices = @transform_3, window_bounds = array<i64: 1, 32, 32>}, {transform_indices = @transform_4, window_bounds = array<i64: 1, 32, 128>}, {transform_indices = @transform_5, window_bounds = array<i64: 1, 1, 128>}, {transform_indices = @transform_6, window_bounds = array<i64: 1, 128, 32>}, {transform_indices = @transform_7, window_bounds = array<i64: 1, 8, 32>}, {pipeline_mode = #tpu.pipeline_mode<synchronous>, transform_indices = @transform_8, window_bounds = array<i64: 32, 128>}, {pipeline_mode = #tpu.pipeline_mode<synchronous>, transform_indices = @transform_9, window_bounds = array<i64: 1, 128>}, {transform_indices = @transform_10, window_bounds = array<i64: 1, 1, 128>}]} {
    %c0_i32 = arith.constant 0 : i32
    %0 = arith.cmpi eq, %arg0, %c0_i32 : i32
    %1 = arith.extui %0 : i1 to i32
    %c0_i32_0 = arith.constant 0 : i32
    %2 = arith.cmpi ne, %1, %c0_i32_0 : i32
    scf.if %2 {
      %c0_48 = arith.constant 0 : index
      %c0_49 = arith.constant 0 : index
      %c0_50 = arith.constant 0 : index
      %165 = vector.load %arg3[%c0_48, %c0_49, %c0_50] : memref<1x8x32xf32, #tpu.memory_space<vmem>>, vector<1x8x32xf32>
      %166 = vector.shape_cast %165 : vector<1x8x32xf32> to vector<8x32xf32>
      %167 = arith.index_cast %arg1 : i32 to index
      %c0_51 = arith.constant 0 : index
      %c0_52 = arith.constant 0 : index
      %168 = vector.load %arg14[%167, %c0_51, %c0_52] : memref<2x8x32xf32, #tpu.memory_space<vmem>>, vector<1x8x32xf32>
      %169 = vector.shape_cast %168 : vector<1x8x32xf32> to vector<8x32xf32>
      %170 = vector.shape_cast %166 : vector<8x32xf32> to vector<1x8x32xf32>
      tpu.vector_store %arg14[%167, %c0_51, %c0_52], %170 {strides = array<i32>} : memref<2x8x32xf32, #tpu.memory_space<vmem>>, vector<1x8x32xf32>,
    } else {
    }
    %3 = arith.index_cast %arg1 : i32 to index
    %c0 = arith.constant 0 : index
    %c0_1 = arith.constant 0 : index
    %4 = vector.load %arg14[%3, %c0, %c0_1] : memref<2x8x32xf32, #tpu.memory_space<vmem>>, vector<1x8x32xf32>
    %5 = vector.shape_cast %4 : vector<1x8x32xf32> to vector<8x32xf32>
    %c0_2 = arith.constant 0 : index
    %c0_3 = arith.constant 0 : index
    %c0_4 = arith.constant 0 : index
    %6 = vector.load %arg10[%c0_2, %c0_3, %c0_4] : memref<1x8x32xf32, #tpu.memory_space<vmem>>, vector<1x8x32xf32>
    %7 = vector.shape_cast %6 : vector<1x8x32xf32> to vector<8x32xf32>
    %8 = arith.truncf %5 : vector<8x32xf32> to vector<8x32xbf16>
    %c0_5 = arith.constant 0 : index
    %c0_6 = arith.constant 0 : index
    %c0_7 = arith.constant 0 : index
    %9 = vector.load %arg4[%c0_5, %c0_6, %c0_7] : memref<1x32x96xbf16, #tpu.memory_space<vmem>>, vector<1x32x96xbf16>
    %10 = vector.shape_cast %9 : vector<1x32x96xbf16> to vector<32x96xbf16>
    %cst = arith.constant dense<0.000000e+00> : vector<8x96xf32>
    %11 = tpu.matmul %8, %10, %cst {dimension_numbers = #tpu.dot_dimension_numbers<[1], [0], [0], [1], [0, 0, 1, 1], [], []>} : vector<8x32xbf16>, vector<32x96xbf16>, vector<8x96xf32> -> vector<8x96xf32>
    %c0_8 = arith.constant 0 : index
    %c0_9 = arith.constant 0 : index
    %c0_10 = arith.constant 0 : index
    %12 = vector.load %arg5[%c0_8, %c0_9, %c0_10] : memref<1x1x96xf32, #tpu.memory_space<vmem>>, vector<1x1x96xf32>
    %13 = vector.shape_cast %12 : vector<1x1x96xf32> to vector<1x96xf32>
    %14 = vector.broadcast %13 : vector<1x96xf32> to vector<8x96xf32>
    %15 = arith.addf %11, %14 : vector<8x96xf32>
    %16 = vector.extract_strided_slice %15 {offsets = [0, 0], sizes = [8, 32], strides = [1, 1]} : vector<8x96xf32> to vector<8x32xf32>
    %17 = vector.extract_strided_slice %16 {offsets = [0, 0], sizes = [8, 8], strides = [1, 1]} : vector<8x32xf32> to vector<8x8xf32>
    %18 = vector.extract_strided_slice %16 {offsets = [0, 8], sizes = [8, 8], strides = [1, 1]} : vector<8x32xf32> to vector<8x8xf32>
    %19 = vector.extract_strided_slice %16 {offsets = [0, 16], sizes = [8, 8], strides = [1, 1]} : vector<8x32xf32> to vector<8x8xf32>
    %20 = vector.extract_strided_slice %16 {offsets = [0, 24], sizes = [8, 8], strides = [1, 1]} : vector<8x32xf32> to vector<8x8xf32>
    %21 = vector.shape_cast %17 : vector<8x8xf32> to vector<1x8x8xf32>
    %22 = vector.shape_cast %18 : vector<8x8xf32> to vector<1x8x8xf32>
    %23 = vector.shape_cast %19 : vector<8x8xf32> to vector<1x8x8xf32>
    %24 = vector.shape_cast %20 : vector<8x8xf32> to vector<1x8x8xf32>
    %25 = tpu.concatenate %21, %22, %23, %24 in 0 : vector<1x8x8xf32>, vector<1x8x8xf32>, vector<1x8x8xf32>, vector<1x8x8xf32> -> vector<4x8x8xf32>
    %26 = arith.truncf %25 : vector<4x8x8xf32> to vector<4x8x8xbf16>
    %27 = vector.extract_strided_slice %15 {offsets = [0, 32], sizes = [8, 32], strides = [1, 1]} : vector<8x96xf32> to vector<8x32xf32>
    %28 = vector.extract_strided_slice %27 {offsets = [0, 0], sizes = [8, 8], strides = [1, 1]} : vector<8x32xf32> to vector<8x8xf32>
    %29 = vector.extract_strided_slice %27 {offsets = [0, 8], sizes = [8, 8], strides = [1, 1]} : vector<8x32xf32> to vector<8x8xf32>
    %30 = vector.extract_strided_slice %27 {offsets = [0, 16], sizes = [8, 8], strides = [1, 1]} : vector<8x32xf32> to vector<8x8xf32>
    %31 = vector.extract_strided_slice %27 {offsets = [0, 24], sizes = [8, 8], strides = [1, 1]} : vector<8x32xf32> to vector<8x8xf32>
    %32 = vector.shape_cast %28 : vector<8x8xf32> to vector<1x8x8xf32>
    %33 = vector.shape_cast %29 : vector<8x8xf32> to vector<1x8x8xf32>
    %34 = vector.shape_cast %30 : vector<8x8xf32> to vector<1x8x8xf32>
    %35 = vector.shape_cast %31 : vector<8x8xf32> to vector<1x8x8xf32>
    %36 = tpu.concatenate %32, %33, %34, %35 in 0 : vector<1x8x8xf32>, vector<1x8x8xf32>, vector<1x8x8xf32>, vector<1x8x8xf32> -> vector<4x8x8xf32>
    %37 = arith.truncf %36 : vector<4x8x8xf32> to vector<4x8x8xbf16>
    %38 = vector.extract_strided_slice %15 {offsets = [0, 64], sizes = [8, 32], strides = [1, 1]} : vector<8x96xf32> to vector<8x32xf32>
    %39 = vector.extract_strided_slice %38 {offsets = [0, 0], sizes = [8, 8], strides = [1, 1]} : vector<8x32xf32> to vector<8x8xf32>
    %40 = vector.extract_strided_slice %38 {offsets = [0, 8], sizes = [8, 8], strides = [1, 1]} : vector<8x32xf32> to vector<8x8xf32>
    %41 = vector.extract_strided_slice %38 {offsets = [0, 16], sizes = [8, 8], strides = [1, 1]} : vector<8x32xf32> to vector<8x8xf32>
    %42 = vector.extract_strided_slice %38 {offsets = [0, 24], sizes = [8, 8], strides = [1, 1]} : vector<8x32xf32> to vector<8x8xf32>
    %43 = vector.shape_cast %39 : vector<8x8xf32> to vector<1x8x8xf32>
    %44 = vector.shape_cast %40 : vector<8x8xf32> to vector<1x8x8xf32>
    %45 = vector.shape_cast %41 : vector<8x8xf32> to vector<1x8x8xf32>
    %46 = vector.shape_cast %42 : vector<8x8xf32> to vector<1x8x8xf32>
    %47 = tpu.concatenate %43, %44, %45, %46 in 0 : vector<1x8x8xf32>, vector<1x8x8xf32>, vector<1x8x8xf32>, vector<1x8x8xf32> -> vector<4x8x8xf32>
    %48 = arith.truncf %47 : vector<4x8x8xf32> to vector<4x8x8xbf16>
    "tpu.trace_start"() <{level = 10 : i32, message = "nqd,nkd->nqk"}> : () -> ()
    %cst_11 = arith.constant dense<0.000000e+00> : vector<4x8x8xf32>
    %49 = tpu.matmul %26, %37, %cst_11 {dimension_numbers = #tpu.dot_dimension_numbers<[2], [2], [1], [1], [0, 0, 0, 1, 1, 1], [0], [0]>} : vector<4x8x8xbf16>, vector<4x8x8xbf16>, vector<4x8x8xf32> -> vector<4x8x8xf32>
    "tpu.trace_stop"() : () -> ()
    %cst_12 = arith.constant 0.353553385 : f32
    %50 = vector.broadcast %cst_12 : f32 to vector<4x8x8xf32>
    %51 = arith.mulf %49, %50 : vector<4x8x8xf32>
    %cst_13 = arith.constant dense<0xFF800000> : vector<4x8xf32>
    %52 = vector.multi_reduction <maximumf>, %51, %cst_13 [2] : vector<4x8x8xf32> to vector<4x8xf32>
    %53 = vector.shape_cast %52 : vector<4x8xf32> to vector<4x8x1xf32>
    %54 = vector.broadcast %53 : vector<4x8x1xf32> to vector<4x8x8xf32>
    %55 = arith.subf %51, %54 : vector<4x8x8xf32>
    %56 = math.exp %55 : vector<4x8x8xf32>
    %cst_14 = arith.constant dense<0.000000e+00> : vector<4x8xf32>
    %57 = vector.multi_reduction <add>, %56, %cst_14 [2] : vector<4x8x8xf32> to vector<4x8xf32>
    %58 = vector.shape_cast %57 : vector<4x8xf32> to vector<4x8x1xf32>
    %59 = tpu.reciprocal %58 {approx = true} : vector<4x8x1xf32> -> vector<4x8x1xf32>
    %60 = vector.broadcast %59 : vector<4x8x1xf32> to vector<4x8x8xf32>
    %61 = arith.mulf %56, %60 : vector<4x8x8xf32>
    %62 = arith.truncf %61 : vector<4x8x8xf32> to vector<4x8x8xbf16>
    "tpu.trace_start"() <{level = 10 : i32, message = "nqk,nkd->nqd"}> : () -> ()
    %cst_15 = arith.constant dense<0.000000e+00> : vector<4x8x8xf32>
    %63 = tpu.matmul %62, %48, %cst_15 {dimension_numbers = #tpu.dot_dimension_numbers<[2], [1], [1], [2], [0, 0, 0, 1, 1, 2], [0], [0]>} : vector<4x8x8xbf16>, vector<4x8x8xbf16>, vector<4x8x8xf32> -> vector<4x8x8xf32>
    "tpu.trace_stop"() : () -> ()
    %64 = vector.extract_strided_slice %63 {offsets = [0, 0, 0], sizes = [1, 8, 8], strides = [1, 1, 1]} : vector<4x8x8xf32> to vector<1x8x8xf32>
    %65 = vector.shape_cast %64 : vector<1x8x8xf32> to vector<8x8xf32>
    %66 = vector.extract_strided_slice %63 {offsets = [1, 0, 0], sizes = [1, 8, 8], strides = [1, 1, 1]} : vector<4x8x8xf32> to vector<1x8x8xf32>
    %67 = vector.shape_cast %66 : vector<1x8x8xf32> to vector<8x8xf32>
    %68 = vector.extract_strided_slice %63 {offsets = [2, 0, 0], sizes = [1, 8, 8], strides = [1, 1, 1]} : vector<4x8x8xf32> to vector<1x8x8xf32>
    %69 = vector.shape_cast %68 : vector<1x8x8xf32> to vector<8x8xf32>
    %70 = vector.extract_strided_slice %63 {offsets = [3, 0, 0], sizes = [1, 8, 8], strides = [1, 1, 1]} : vector<4x8x8xf32> to vector<1x8x8xf32>
    %71 = vector.shape_cast %70 : vector<1x8x8xf32> to vector<8x8xf32>
    %72 = tpu.concatenate %65, %67, %69, %71 in 1 : vector<8x8xf32>, vector<8x8xf32>, vector<8x8xf32>, vector<8x8xf32> -> vector<8x32xf32>
    %73 = arith.truncf %72 : vector<8x32xf32> to vector<8x32xbf16>
    %c0_16 = arith.constant 0 : index
    %c0_17 = arith.constant 0 : index
    %c0_18 = arith.constant 0 : index
    %74 = vector.load %arg6[%c0_16, %c0_17, %c0_18] : memref<1x32x32xbf16, #tpu.memory_space<vmem>>, vector<1x32x32xbf16>
    %75 = vector.shape_cast %74 : vector<1x32x32xbf16> to vector<32x32xbf16>
    %cst_19 = arith.constant dense<0.000000e+00> : vector<8x32xf32>
    %76 = tpu.matmul %73, %75, %cst_19 {dimension_numbers = #tpu.dot_dimension_numbers<[1], [0], [0], [1], [0, 0, 1, 1], [], []>} : vector<8x32xbf16>, vector<32x32xbf16>, vector<8x32xf32> -> vector<8x32xf32>
    %77 = vector.extract_strided_slice %7 {offsets = [0, 0], sizes = [1, 32], strides = [1, 1]} : vector<8x32xf32> to vector<1x32xf32>
    %78 = vector.broadcast %77 : vector<1x32xf32> to vector<8x32xf32>
    %79 = arith.addf %76, %78 : vector<8x32xf32>
    %80 = arith.addf %5, %79 : vector<8x32xf32>
    %81 = vector.extract_strided_slice %7 {offsets = [1, 0], sizes = [1, 32], strides = [1, 1]} : vector<8x32xf32> to vector<1x32xf32>
    %82 = vector.extract_strided_slice %7 {offsets = [2, 0], sizes = [1, 32], strides = [1, 1]} : vector<8x32xf32> to vector<1x32xf32>
    %cst_20 = arith.constant dense<0.000000e+00> : vector<8xf32>
    %83 = vector.multi_reduction <add>, %80, %cst_20 [1] : vector<8x32xf32> to vector<8xf32>
    %84 = vector.shape_cast %83 : vector<8xf32> to vector<8x1xf32>
    %cst_21 = arith.constant 3.200000e+01 : f32
    %85 = vector.broadcast %cst_21 : f32 to vector<8x1xf32>
    %86 = arith.divf %84, %85 : vector<8x1xf32>
    %87 = vector.broadcast %86 : vector<8x1xf32> to vector<8x32xf32>
    %88 = arith.subf %80, %87 : vector<8x32xf32>
    %89 = arith.mulf %88, %88 : vector<8x32xf32>
    %cst_22 = arith.constant dense<0.000000e+00> : vector<8xf32>
    %90 = vector.multi_reduction <add>, %89, %cst_22 [1] : vector<8x32xf32> to vector<8xf32>
    %91 = vector.shape_cast %90 : vector<8xf32> to vector<8x1xf32>
    %cst_23 = arith.constant 3.200000e+01 : f32
    %92 = vector.broadcast %cst_23 : f32 to vector<8x1xf32>
    %93 = arith.divf %91, %92 : vector<8x1xf32>
    %94 = vector.broadcast %86 : vector<8x1xf32> to vector<8x32xf32>
    %95 = arith.subf %80, %94 : vector<8x32xf32>
    %cst_24 = arith.constant 9.99999996E-13 : f32
    %96 = vector.broadcast %cst_24 : f32 to vector<8x1xf32>
    %97 = arith.addf %93, %96 : vector<8x1xf32>
    %98 = math.rsqrt %97 : vector<8x1xf32>
    %99 = vector.broadcast %98 : vector<8x1xf32> to vector<8x32xf32>
    %100 = arith.mulf %95, %99 : vector<8x32xf32>
    %101 = vector.broadcast %81 : vector<1x32xf32> to vector<8x32xf32>
    %102 = arith.mulf %100, %101 : vector<8x32xf32>
    %103 = vector.broadcast %82 : vector<1x32xf32> to vector<8x32xf32>
    %104 = arith.addf %102, %103 : vector<8x32xf32>
    %105 = arith.truncf %104 : vector<8x32xf32> to vector<8x32xbf16>
    %c0_25 = arith.constant 0 : index
    %c0_26 = arith.constant 0 : index
    %c0_27 = arith.constant 0 : index
    %106 = vector.load %arg7[%c0_25, %c0_26, %c0_27] : memref<1x32x128xbf16, #tpu.memory_space<vmem>>, vector<1x32x128xbf16>
    %107 = vector.shape_cast %106 : vector<1x32x128xbf16> to vector<32x128xbf16>
    %cst_28 = arith.constant dense<0.000000e+00> : vector<8x128xf32>
    %108 = tpu.matmul %105, %107, %cst_28 {dimension_numbers = #tpu.dot_dimension_numbers<[1], [0], [0], [1], [0, 0, 1, 1], [], []>} : vector<8x32xbf16>, vector<32x128xbf16>, vector<8x128xf32> -> vector<8x128xf32>
    %c0_29 = arith.constant 0 : index
    %c0_30 = arith.constant 0 : index
    %c0_31 = arith.constant 0 : index
    %109 = vector.load %arg8[%c0_29, %c0_30, %c0_31] : memref<1x1x128xf32, #tpu.memory_space<vmem>>, vector<1x1x128xf32>
    %110 = vector.shape_cast %109 : vector<1x1x128xf32> to vector<1x128xf32>
    %111 = vector.broadcast %110 : vector<1x128xf32> to vector<8x128xf32>
    %112 = arith.addf %108, %111 : vector<8x128xf32>
    %113 = arith.mulf %112, %112 : vector<8x128xf32>
    %114 = arith.mulf %112, %113 : vector<8x128xf32>
    %cst_32 = arith.constant 4.471500e-02 : f32
    %115 = vector.broadcast %cst_32 : f32 to vector<8x128xf32>
    %116 = arith.mulf %115, %114 : vector<8x128xf32>
    %117 = arith.addf %112, %116 : vector<8x128xf32>
    %cst_33 = arith.constant 0.797884583 : f32
    %118 = vector.broadcast %cst_33 : f32 to vector<8x128xf32>
    %119 = arith.mulf %118, %117 : vector<8x128xf32>
    %120 = math.tanh %119 : vector<8x128xf32>
    %cst_34 = arith.constant 1.000000e+00 : f32
    %121 = vector.broadcast %cst_34 : f32 to vector<8x128xf32>
    %122 = arith.addf %121, %120 : vector<8x128xf32>
    %cst_35 = arith.constant 5.000000e-01 : f32
    %123 = vector.broadcast %cst_35 : f32 to vector<8x128xf32>
    %124 = arith.mulf %123, %122 : vector<8x128xf32>
    %125 = arith.mulf %112, %124 : vector<8x128xf32>
    %126 = arith.truncf %125 : vector<8x128xf32> to vector<8x128xbf16>
    %c0_36 = arith.constant 0 : index
    %c0_37 = arith.constant 0 : index
    %c0_38 = arith.constant 0 : index
    %127 = vector.load %arg9[%c0_36, %c0_37, %c0_38] : memref<1x128x32xbf16, #tpu.memory_space<vmem>>, vector<1x128x32xbf16>
    %128 = vector.shape_cast %127 : vector<1x128x32xbf16> to vector<128x32xbf16>
    %cst_39 = arith.constant dense<0.000000e+00> : vector<8x32xf32>
    %129 = tpu.matmul %126, %128, %cst_39 {dimension_numbers = #tpu.dot_dimension_numbers<[1], [0], [0], [1], [0, 0, 1, 1], [], []>} : vector<8x128xbf16>, vector<128x32xbf16>, vector<8x32xf32> -> vector<8x32xf32>
    %130 = vector.extract_strided_slice %7 {offsets = [3, 0], sizes = [1, 32], strides = [1, 1]} : vector<8x32xf32> to vector<1x32xf32>
    %131 = vector.broadcast %130 : vector<1x32xf32> to vector<8x32xf32>
    %132 = arith.addf %129, %131 : vector<8x32xf32>
    %133 = arith.addf %104, %132 : vector<8x32xf32>
    %134 = vector.extract_strided_slice %7 {offsets = [4, 0], sizes = [1, 32], strides = [1, 1]} : vector<8x32xf32> to vector<1x32xf32>
    %135 = vector.extract_strided_slice %7 {offsets = [5, 0], sizes = [1, 32], strides = [1, 1]} : vector<8x32xf32> to vector<1x32xf32>
    %cst_40 = arith.constant dense<0.000000e+00> : vector<8xf32>
    %136 = vector.multi_reduction <add>, %133, %cst_40 [1] : vector<8x32xf32> to vector<8xf32>
    %137 = vector.shape_cast %136 : vector<8xf32> to vector<8x1xf32>
    %cst_41 = arith.constant 3.200000e+01 : f32
    %138 = vector.broadcast %cst_41 : f32 to vector<8x1xf32>
    %139 = arith.divf %137, %138 : vector<8x1xf32>
    %140 = vector.broadcast %139 : vector<8x1xf32> to vector<8x32xf32>
    %141 = arith.subf %133, %140 : vector<8x32xf32>
    %142 = arith.mulf %141, %141 : vector<8x32xf32>
    %cst_42 = arith.constant dense<0.000000e+00> : vector<8xf32>
    %143 = vector.multi_reduction <add>, %142, %cst_42 [1] : vector<8x32xf32> to vector<8xf32>
    %144 = vector.shape_cast %143 : vector<8xf32> to vector<8x1xf32>
    %cst_43 = arith.constant 3.200000e+01 : f32
    %145 = vector.broadcast %cst_43 : f32 to vector<8x1xf32>
    %146 = arith.divf %144, %145 : vector<8x1xf32>
    %147 = vector.broadcast %139 : vector<8x1xf32> to vector<8x32xf32>
    %148 = arith.subf %133, %147 : vector<8x32xf32>
    %cst_44 = arith.constant 9.99999996E-13 : f32
    %149 = vector.broadcast %cst_44 : f32 to vector<8x1xf32>
    %150 = arith.addf %146, %149 : vector<8x1xf32>
    %151 = math.rsqrt %150 : vector<8x1xf32>
    %152 = vector.broadcast %151 : vector<8x1xf32> to vector<8x32xf32>
    %153 = arith.mulf %148, %152 : vector<8x32xf32>
    %154 = vector.broadcast %134 : vector<1x32xf32> to vector<8x32xf32>
    %155 = arith.mulf %153, %154 : vector<8x32xf32>
    %156 = vector.broadcast %135 : vector<1x32xf32> to vector<8x32xf32>
    %157 = arith.addf %155, %156 : vector<8x32xf32>
    %158 = arith.index_cast %arg1 : i32 to index
    %c0_45 = arith.constant 0 : index
    %c0_46 = arith.constant 0 : index
    %159 = vector.load %arg14[%158, %c0_45, %c0_46] : memref<2x8x32xf32, #tpu.memory_space<vmem>>, vector<1x8x32xf32>
    %160 = vector.shape_cast %159 : vector<1x8x32xf32> to vector<8x32xf32>
    %161 = vector.shape_cast %157 : vector<8x32xf32> to vector<1x8x32xf32>
    tpu.vector_store %arg14[%158, %c0_45, %c0_46], %161 {strides = array<i32>} : memref<2x8x32xf32, #tpu.memory_space<vmem>>, vector<1x8x32xf32>,
    %c1_i32 = arith.constant 1 : i32
    %162 = arith.cmpi eq, %arg0, %c1_i32 : i32
    %163 = arith.extui %162 : i1 to i32
    %c0_i32_47 = arith.constant 0 : i32
    %164 = arith.cmpi ne, %163, %c0_i32_47 : i32
    scf.if %164 {
      %165 = arith.index_cast %arg1 : i32 to index
      %166 = memref.load %arg2[%165] : memref<2xi32, #tpu.memory_space<smem>>
      %167 = tpu.iota {dimensions = array<i32: 0>} : vector<8x1xi32>
      %168 = vector.broadcast %166 : i32 to vector<8x1xi32>
      %169 = arith.cmpi eq, %167, %168 : vector<8x1xi32>
      %cst_48 = arith.constant 0.000000e+00 : f32
      %170 = vector.shape_cast %169 : vector<8x1xi1> to vector<8x1xi1>
      %171 = vector.broadcast %170 : vector<8x1xi1> to vector<8x32xi1>
      %172 = vector.broadcast %cst_48 : f32 to vector<8x32xf32>
      %173 = arith.select %171, %157, %172 : vector<8x32xi1>, vector<8x32xf32>
      %cst_49 = arith.constant dense<0.000000e+00> : vector<32xf32>
      %174 = vector.multi_reduction <add>, %173, %cst_49 [0] : vector<8x32xf32> to vector<32xf32>
      %175 = vector.shape_cast %174 : vector<32xf32> to vector<1x32xf32>
      %c0_50 = arith.constant 0 : index
      %c0_51 = arith.constant 0 : index
      %176 = vector.load %arg11[%c0_50, %c0_51] : memref<32x128xf32, #tpu.memory_space<vmem>>, vector<32x128xf32>
      %cst_52 = arith.constant dense<0.000000e+00> : vector<1x128xf32>
      %177 = tpu.matmul %175, %176, %cst_52 {dimension_numbers = #tpu.dot_dimension_numbers<[1], [0], [0], [1], [0, 0, 1, 1], [], []>} : vector<1x32xf32>, vector<32x128xf32>, vector<1x128xf32> -> vector<1x128xf32>
      %c0_53 = arith.constant 0 : index
      %c0_54 = arith.constant 0 : index
      %178 = vector.load %arg12[%c0_53, %c0_54] : memref<1x128xf32, #tpu.memory_space<vmem>>, vector<1x128xf32>
      %179 = arith.addf %177, %178 : vector<1x128xf32>
      %c0_55 = arith.constant 0 : index
      %c0_56 = arith.constant 0 : index
      %c0_57 = arith.constant 0 : index
      %180 = vector.load %arg13[%c0_55, %c0_56, %c0_57] : memref<1x1x128xf32, #tpu.memory_space<vmem>>, vector<1x1x128xf32>
      %181 = vector.shape_cast %180 : vector<1x1x128xf32> to vector<1x128xf32>
      %182 = vector.shape_cast %179 : vector<1x128xf32> to vector<1x1x128xf32>
      tpu.vector_store %arg13[%c0_55, %c0_56, %c0_57], %182 {strides = array<i32>} : memref<1x1x128xf32, #tpu.memory_space<vmem>>, vector<1x1x128xf32>,
    } else {
    }
    return
  }
  func.func @transform_0(%arg0: i32, %arg1: i32, %arg2: memref<2xi32, #tpu.memory_space<smem>>) -> (i32, i32, i32) {
    %c0_i32 = arith.constant 0 : i32
    %c0_i32_0 = arith.constant 0 : i32
    %c0_i32_1 = arith.constant 0 : i32
    return %arg1, %c0_i32, %c0_i32_0 : i32, i32, i32
  }
  func.func @transform_1(%arg0: i32, %arg1: i32, %arg2: memref<2xi32, #tpu.memory_space<smem>>) -> (i32, i32, i32) {
    %c0_i32 = arith.constant 0 : i32
    %c0_i32_0 = arith.constant 0 : i32
    %c0_i32_1 = arith.constant 0 : i32
    return %arg0, %c0_i32, %c0_i32_0 : i32, i32, i32
  }
  func.func @transform_2(%arg0: i32, %arg1: i32, %arg2: memref<2xi32, #tpu.memory_space<smem>>) -> (i32, i32, i32) {
    %c0_i32 = arith.constant 0 : i32
    %c0_i32_0 = arith.constant 0 : i32
    %c0_i32_1 = arith.constant 0 : i32
    return %arg0, %c0_i32, %c0_i32_0 : i32, i32, i32
  }
  func.func @transform_3(%arg0: i32, %arg1: i32, %arg2: memref<2xi32, #tpu.memory_space<smem>>) -> (i32, i32, i32) {
    %c0_i32 = arith.constant 0 : i32
    %c0_i32_0 = arith.constant 0 : i32
    %c0_i32_1 = arith.constant 0 : i32
    return %arg0, %c0_i32, %c0_i32_0 : i32, i32, i32
  }
  func.func @transform_4(%arg0: i32, %arg1: i32, %arg2: memref<2xi32, #tpu.memory_space<smem>>) -> (i32, i32, i32) {
    %c0_i32 = arith.constant 0 : i32
    %c0_i32_0 = arith.constant 0 : i32
    %c0_i32_1 = arith.constant 0 : i32
    return %arg0, %c0_i32, %c0_i32_0 : i32, i32, i32
  }
  func.func @transform_5(%arg0: i32, %arg1: i32, %arg2: memref<2xi32, #tpu.memory_space<smem>>) -> (i32, i32, i32) {
    %c0_i32 = arith.constant 0 : i32
    %c0_i32_0 = arith.constant 0 : i32
    %c0_i32_1 = arith.constant 0 : i32
    return %arg0, %c0_i32, %c0_i32_0 : i32, i32, i32
  }
  func.func @transform_6(%arg0: i32, %arg1: i32, %arg2: memref<2xi32, #tpu.memory_space<smem>>) -> (i32, i32, i32) {
    %c0_i32 = arith.constant 0 : i32
    %c0_i32_0 = arith.constant 0 : i32
    %c0_i32_1 = arith.constant 0 : i32
    return %arg0, %c0_i32, %c0_i32_0 : i32, i32, i32
  }
  func.func @transform_7(%arg0: i32, %arg1: i32, %arg2: memref<2xi32, #tpu.memory_space<smem>>) -> (i32, i32, i32) {
    %c0_i32 = arith.constant 0 : i32
    %c0_i32_0 = arith.constant 0 : i32
    %c0_i32_1 = arith.constant 0 : i32
    return %arg0, %c0_i32, %c0_i32_0 : i32, i32, i32
  }
  func.func @transform_8(%arg0: i32, %arg1: i32, %arg2: memref<2xi32, #tpu.memory_space<smem>>) -> (i32, i32) {
    %c0_i32 = arith.constant 0 : i32
    %c0_i32_0 = arith.constant 0 : i32
    %c0_i32_1 = arith.constant 0 : i32
    return %c0_i32, %c0_i32_0 : i32, i32
  }
  func.func @transform_9(%arg0: i32, %arg1: i32, %arg2: memref<2xi32, #tpu.memory_space<smem>>) -> (i32, i32) {
    %c0_i32 = arith.constant 0 : i32
    %c0_i32_0 = arith.constant 0 : i32
    %c0_i32_1 = arith.constant 0 : i32
    return %c0_i32, %c0_i32_0 : i32, i32
  }
  func.func @transform_10(%arg0: i32, %arg1: i32, %arg2: memref<2xi32, #tpu.memory_space<smem>>) -> (i32, i32, i32) {
    %c0_i32 = arith.constant 0 : i32
    %c0_i32_0 = arith.constant 0 : i32
    %c0_i32_1 = arith.constant 0 : i32
    return %arg1, %c0_i32, %c0_i32_0 : i32, i32, i32
  }
}

</mosaic_0001>

<bundles_post_ra>
// kernel: tpu_custom_call.1
= control target key start
LH: loop header
LB: loop body
LE: loop exit
PB: predicated region body
PF: predicated region fallthrough
CT: control target
= control target key end

     0   :  { %s2468_s0 = inlined_call_operand.hbm [shape: s32[2], index: 0, kind: input, shape index: {}]   ;;  %s2469_s1 = inlined_call_operand.vmem [shape: f32[2,8,32], index: 1, kind: input, shape index: {}]   ;;  %s2470_s2 = inlined_call_operand.vmem [shape: bf16[2,32,96], index: 2, kind: input, shape index: {}]   ;;  %s2471_s3 = inlined_call_operand.vmem [shape: f32[2,1,96], index: 3, kind: input, shape index: {}]   ;;  %s2472_s4 = inlined_call_operand.vmem [shape: bf16[2,32,32], index: 4, kind: input, shape index: {}]   ;;  %s2473_s5 = inlined_call_operand.vmem [shape: bf16[2,32,128], index: 5, kind: input, shape index: {}]   ;;  %s2474_s6 = inlined_call_operand.vmem [shape: f32[2,1,128], index: 6, kind: input, shape index: {}]   ;;  %s2475_s7 = inlined_call_operand.vmem [shape: bf16[2,128,32], index: 7, kind: input, shape index: {}]   ;;  %s2476_s8 = inlined_call_operand.vmem [shape: f32[2,8,32], index: 8, kind: input, shape index: {}]   ;;  %s2477_s9 = inlined_call_operand.vmem [shape: f32[32,128], index: 9, kind: input, shape index: {}]   ;;  %s2478_s10 = inlined_call_operand.vmem [shape: f32[1,128], index: 10, kind: input, shape index: {}]   ;;  %s2479_s11 = inlined_call_operand.hbm [shape: f32[2,1,128], index: 11, kind: output, shape index: {}]  }
   0x1   :  { %2491 = sst [smem:[#allocation19_spill]] %s2469_s1  ;;  %s1932_s19 = scalar_lea.hbm %s2468_s0, 16 }
   0x2   :  { %2492 = sst [smem:[#allocation20_spill]] %s2470_s2  ;;  %p1933_p0 = scmp.ne.s32.totalorder %s2468_s0, %s1932_s19 }
   0x3   :  { %2493 = sst [smem:[#allocation21_spill]] %s2479_s11  ;;  %p1936_p1 = scmp.lt.u32.totalorder %s1932_s19, %s2468_s0 }
   0x5   :  { %p1938_p2 = pnand %p1936_p1, %p1933_p0 }
   0x7   :  { %1941 = shalt.err (!%p1938_p2)  }
   0x8   :  { %s2040_s24 = smov [#allocation4]  }
   0x9   :  { %17 = dma.hbm_to_smem %s2468_s0, 16, %s2040_s24, [#allocation3] }
   0xa   :  { %2002 = dma.done.wait [#allocation3], 16 }
   0xb   :  { %2003 = vsyncadd [#allocation3], 4294967280 }
   0xc   :  { %19 = sfence }
   0xd   :  { %20 = vsyncpa [#allocation6], 0 }
   0xe   :  { %22 = vsyncpa [#allocation6 + $0x1], 0  ;;  %s2127_s27 = smov 0   ;;  %s2129_s28 = smov 0  }
   0xf   :  { %s2131_s29 = smov 0   ;;  %s2133_s30 = smov 0  }
  0x10   :  { %s2135_s12 = smov 0   ;;  %s2137_s13 = smov 0  }
  0x11   :  { %s2139_s14 = smov 0   ;;  %s2141_s0 = smov 0  }
  0x12 LB: > { %2494 = sst [smem:[#allocation9_spill]] %s2010_s27  ;;  %s1609_s15 = sadd.s32 4294967295, %s2038_s0   ;;  %s2038_s0 = sphi %s2141_s0, %s28_s0   ;;  %s2034_s14 = sphi %s2139_s14, %s2522_s14   ;;  %s2030_s13 = sphi %s2137_s13, %s2521_s13   ;;  %s2026_s12 = sphi %s2135_s12, %s2520_s12   ;;  %s2022_s30 = sphi %s2133_s30, %s2519_s30   ;;  %s2018_s29 = sphi %s2131_s29, %s2518_s29   ;;  %s2014_s28 = sphi %s2129_s28, %s2524_s28   ;;  %s2010_s27 = sphi %s2127_s27, %s2523_s27  }
  0x13   : > { %2495 = sst [smem:[#allocation10_spill]] %s2018_s29  ;;  %s1610_s16 = sadd.s32 4294967294, %s2038_s0  }
  0x14   : > { %2496 = sst [smem:[#allocation11_spill]] %s2030_s13  ;;  %s37_s17 = sadd.s32 1, %s2030_s13 }
  0x15   : > { %2497 = sst [smem:[#allocation12_spill]] %s2034_s14  ;;  %s40_s18 = sadd.s32 1, %s2034_s14 }
  0x16   : > { %2498 = sst [smem:[#allocation13_spill]] %s2038_s0  ;;  %p38_p3 = scmp.ge.s32.totalorder %s37_s17, 2 }
  0x17   : > { %s297_s19 = sadd.s32 1, %s2018_s29  ;;  %p307_p4 = scmp.ne.s32.totalorder %s2018_s29, %s2014_s28 }
  0x18   : > { %p308_p5 = scmp.eq.s32.totalorder %s1609_s15, 3  ;;  %s2526_s17 = smov (%p38_p3, %s37_s17), 0 }
  0x19   : > { %2499 = sst [smem:[#allocation14_spill]] %s2526_s17  ;;  %s2528_s18 = smov (!%p38_p3, %s40_s18), %s2034_s14 }
  0x1a   : > { %s294_s20 = ssub.s32 %s2030_s13, %s2526_s17  ;;  %p2179_p6 = por %p308_p5, %p307_p4 }
  0x1b   : > { %p42_p7 = scmp.ge.s32.totalorder %s2528_s18, 2  ;;  %p295_p8 = scmp.eq.s32.totalorder %s294_s20, 0 }
  0x1c   : > { %s2500_s21 = scalar_select %p2179_p6, 1, 0 }
  0x1d   : > { %p313_p9 = scmp.ne.s32.totalorder %s2014_s28, %s2010_s27  ;;  %p314_p10 = scmp.eq.s32.totalorder %s1610_s16, 3 }
  0x1e   : > { %2501 = sst [smem:[#allocation15_spill]] %s2500_s21  ;;  %s2530_s18 = smov (%p42_p7, %s2528_s18), 0 }
  0x1f   : > { %2502 = sst [smem:[#allocation16_spill]] %s2530_s18  ;;  %p2190_p11 = por %p314_p10, %p313_p9 }
  0x20   : > { %s2188_s22 = scalar_select %p295_p8, %s2018_s29, %s297_s19  }
  0x21   : > { %s2504_s23 = scalar_select %p2190_p11, 1, 0 }
  0x22   : > { %2503 = sst [smem:[#allocation17_spill]] %s2188_s22  ;;  %p1613_p12 = scmp.ge.s32.totalorder %s2038_s0, 1 }
  0x23   : > { %2505 = sst [smem:[#allocation18_spill]] %s2504_s23  ;;  %p396_p13 = scmp.lt.s32.totalorder %s2038_s0, 5 }
  0x25   : > { %p397_p0 = pnand %p1613_p12, %p396_p13 }
  0x26   : > { %p462_p1 = scmp.lt.s32.totalorder (!%p397_p0), %s2022_s30, 1  ;;  %p466_p2 = scmp.lt.s32.totalorder (!%p397_p0), %s2026_s12, 1 }
  0x27   : > { %400 = sbr.rel (%p397_p0) target bundleno = 2951 (0xb87), region = 60  ;;  %s2506_s1 = sld [smem:[#allocation19_spill]] (!%p397_p0) }
  0x28   : > { %s2507_s2 = sld [smem:[#allocation20_spill]] (!%p397_p0)  ;;  %p1624_p3 = scmp.ne.s32.totalorder (!%p397_p0), %s2026_s12, 0 }
  0x2e   : > { %s463_s25 = scalar_select %p462_p1, %s2022_s30, 1 }
  0x2f   : > { %s2201_s26 = scalar_select %p466_p2, %s2026_s12, 1 }
  0x30   : > { %s1614_s15 = sshll.u32 %s463_s25, 3  ;;  %vm504_vm0 = vcmask (!%p1624_p3), 261120  }
  0x31   : > { %s465_s20 = scalar_lea.vmem %s2506_s1, %s1614_s15  ;;  %s1659_s18 = sshll.u32 %s2201_s26, 4 }
  0x32   : > { %s470_s24 = scalar_lea.vmem %s2507_s2, %s1659_s18  ;;  %s2217_s0 = scalar_lea.vmem %s2472_s4, %s1659_s18  ;;  %v501_v0 = vld [vmem:[%s465_s20] sm:$0xff] (!%p1624_p3) }
  0x33   : > { %s2222_s21 = scalar_lea.vmem %s2473_s5, %s1659_s18  ;;  %s486_s19 = scalar_lea.vmem %s2474_s6, %s2201_s26 }
  0x34   : > { %s1662_s14 = sshll.u32 %s2201_s26, 6  ;;  %s1623_s22 = sshll.u32 %s2201_s26, 3 }
  0x35   : > { %s2232_s13 = scalar_lea.vmem %s2475_s7, %s1662_s14  ;;  %s2238_s23 = scalar_lea.vmem %s2476_s8, %s1623_s22 }
  0x36   : > { %s2508_s2 = sand.u32 1, %s2014_s28   ;;  %500 = sbr.rel (%p1624_p3) target bundleno = 61 (0x3d), region = 64 }
  0x37   : > { %s2242_s11 = scalar_lea.vmem [#allocation5], %s2508_s2  ;;  %s1625_s18 = sshll.u32 (!%p1624_p3), %s2022_s30, 3 }
  0x38   : > { %s503_s25 = scalar_lea.vmem (!%p1624_p3), [#allocation2], %s1625_s18 }
  0x39   : > { %505 = vst.msk [vmem:[%s503_s25] sm:$0xff] (!%p1624_p3), %vm504_vm0, %v501_v0 }
  0x3d PF: > { %v1896_v1 = vld [vmem:[%s470_s24] sm:$0xff]   ;;  %v2041_v2 = vmov 0.0   ;;  %v1897_v3 = vld [vmem:[%s470_s24 + $0x8] sm:$0xff]   ;;  %vm2042_vm1 = vmmov 0   ;;  %s1626_s1 = sshll.u32 %s2022_s30, 3  ;;  %vm534_vm2 = vcmask 261120   ;;  %s2509_s20 = scalar_lea.vmem %s2471_s3, %s2201_s26 }
  0x3e   : > { %1702 = vmatprep.subr.bf16.mxu0 %v2041_v2  ;;  %1722 = vmatprep.subr.bf16.mxu1 %v2041_v2  ;;  %s2254_s2 = scalar_lea.vmem [#allocation2], %s1626_s1  ;;  %v1627_v6 = vld [vmem:[%s2509_s20] ss:$0 sm:$0xff]  ;;  %s2043_s15 = smov 104   ;;  %vm595_vm3 = vcmask 64512   ;;  %vm846_vm4 = vcmask 1043456  }
  0x3f   : > { %1703 = vmatpush3.bf16.msra.mxu0 %v1896_v1  ;;  %1706 = vmatprep.mubr.msk.bf16.mxu0 %vm2042_vm1, %v2041_v2  ;;  %s2044_s16 = smov 120   ;;  %s2045_s14 = smov 112   ;;  %vm1047_vm5 = vcmask 130048   ;;  %vm1049_vm6 = vcmask 195584  }
  0x40   : > { %1704 = vmatprep.subr.bf16.mxu0 %v2041_v2  ;;  %1724 = vmatprep.mubr.msk.bf16.mxu1 %vm2042_vm1, %v2041_v2  ;;  %v2257_v4 = vld [vmem:[%s2254_s2] sm:$0xff]  ;;  %s2046_s17 = smov 96   ;;  %s2047_s22 = smov 64  }
  0x41   : > { %v510_v5 = vpack.c.bf16 %v2257_v4, %v2257_v4  ;;  %s2048_s27 = smov 8   ;;  %s2049_s18 = smov 16  }
  0x42   : > { %s2050_s25 = smov 24   ;;  %p1654_p4 = scmp.ne.s32.totalorder %s2026_s12, 1 }
  0x43   : > { %1705 = vmatpush3.bf16.msra.mxu0 %v1897_v3  ;;  %vm2052_vm7 = vmmov (!%p1654_p4), 0   ;;  %s1354_s12 = sld [smem:[#allocation4 + %s2022_s30]] (!%p1654_p4) }
  0x44   : > { %1710 = vmatprep.subr.bf16.mxu0 %v2041_v2 }
  0x46   : > { %1707 = vmatmul.mubr.msk.bf16.vlgmr.msra.gmra.mrb[0].mxu0 %vm534_vm2, %v510_v5 }
  0x47   : > { %1712 = vmatprep.mubr.msk.bf16.mxu0 %vm2042_vm1, %v2041_v2 }
 0x119   : > { %v572_v7 = vpop.f32.mrb[0].mxu0 }
 0x11a   : > { %v573_v8 = vadd.f32 %v1627_v6, %v572_v7  ;;  %v1708_v9 = vpop.f32.mrb[1].mxu0 }
 0x11b   : > { %v575_v10 = vpop.f32.mrb[2].mxu0 }
 0x11c   : > { %585 = vrot.lane.b32.xlu1 %v573_v8, %s2043_s15  ;;  %579 = vrot.lane.b32.xlu0 %v573_v8, %s2044_s16  ;;  %v1709_v11 = vpop.f32.mrb[3].mxu0  ;;  %v2270_v12 = vpack.c.bf16 %v573_v8, %v573_v8 }
 0x120   : > { %582 = vrot.lane.b32.xlu0 %v573_v8, %s2045_s14  ;;  %593 = vrot.lane.b32.xlu1 %v2270_v12, %s2046_s17 }
 0x18e   : > { %v586_v13 = vpop.permute.xlu1 %585  ;;  %v580_v14 = vpop.permute.xlu0 %579 }
 0x18f   : > { %v589_v15 = vpack.c.bf16 %v580_v14, %v580_v14  ;;  %v2273_v18 = vpack.c.bf16 %v586_v13, %v586_v13 }
 0x191   : > { %643 = vrot.lane.b32.xlu0 %v589_v15, %s2046_s17 }
 0x192   : > { %v583_v16 = vpop.permute.xlu0 %582  ;;  %v594_v17 = vpop.permute.xlu1 %593 }
 0x193   : > { %v2275_v19 = vpack.c.bf16 %v583_v16, %v583_v16  ;;  %v600_v20 = vsel %vm595_vm3, %v594_v17, 0 }
 0x194   : > { %1711 = vmatpush3.bf16.xpose.msra.mxu0 %v600_v20 }
 0x195   : > { %741 = vrot.lane.b32.xlu0 %v2273_v18, %s2046_s17  ;;  %692 = vrot.lane.b32.xlu1 %v2275_v19, %s2046_s17 }
 0x196   : > { %1716 = vmatprep.subr.bf16.mxu0 %v2041_v2 }
 0x19b   : > { %1713 = vmatmul.mubr.msk.bf16.vlgmr.msra.gmra.mrb[4].mxu0 %vm595_vm3, %v2270_v12 }
 0x19c   : > { %1718 = vmatprep.mubr.msk.bf16.mxu0 %vm2042_vm1, %v2041_v2 }
 0x203   : > { %v644_v21 = vpop.permute.xlu0 %643 }
 0x204   : > { %v649_v22 = vsel %vm595_vm3, %v644_v21, 0 }
 0x205   : > { %1717 = vmatpush3.bf16.xpose.msra.mxu0 %v649_v22 }
 0x206   : > { %1728 = vmatprep.subr.bf16.mxu0 %v2041_v2 }
 0x207   : > { %v693_v23 = vpop.permute.xlu1 %692  ;;  %v742_v25 = vpop.permute.xlu0 %741 }
 0x208   : > { %v698_v24 = vsel %vm595_vm3, %v693_v23, 0  ;;  %v747_v26 = vsel %vm595_vm3, %v742_v25, 0 }
 0x209   : > { %1723 = vmatpush3.bf16.xpose.msra.mxu1 %v698_v24 }
 0x20a   : > { %1734 = vmatprep.subr.bf16.mxu1 %v2041_v2 }
 0x20c   : > { %1719 = vmatmul.mubr.msk.bf16.vlgmr.msra.gmra.mrb[8].mxu0 %vm595_vm3, %v589_v15 }
 0x20d   : > { %1729 = vmatpush3.bf16.xpose.msra.mxu0 %v747_v26  ;;  %1730 = vmatprep.mubr.msk.bf16.mxu0 %vm2042_vm1, %v2041_v2 }
 0x20e   : > { %1740 = vmatprep.subr.bf16.mxu0 %v2041_v2 }
 0x210   : > { %1725 = vmatmul.mubr.msk.bf16.vlgmr.msra.gmra.mrb[0].mxu1 %vm595_vm3, %v2275_v19 }
 0x211   : > { %1736 = vmatprep.mubr.msk.bf16.mxu1 %vm2042_vm1, %v2041_v2 }
 0x214   : > { %1731 = vmatmul.mubr.msk.bf16.vlgmr.msra.gmra.mrb[12].mxu0 %vm595_vm3, %v2273_v18 }
 0x215   : > { %1742 = vmatprep.mubr.msk.bf16.mxu0 %vm2042_vm1, %v2041_v2 }
 0x26e   : > { %v636_v27 = vpop.f32.mrb[4].mxu0 }
 0x26f   : > { %v789_v28 = vmul.f32 0.35355338, %v636_v27  ;;  %v1714_v29 = vpop.f32.mrb[5].mxu0 }
 0x270   : > { %v639_v30 = vpop.f32.mrb[6].mxu0 }
 0x271   : > { %v1715_v31 = vpop.f32.mrb[7].mxu0  ;;  %v793_v32 = vsel %vm595_vm3, %v789_v28, -inf }
 0x272   : > { %794 = vmax.xlane.f32.xlu1 %v793_v32 }
 0x2df   : > { %v685_v33 = vpop.f32.mrb[8].mxu0 }
 0x2e0   : > { %v790_v34 = vmul.f32 0.35355338, %v685_v33  ;;  %v1720_v35 = vpop.f32.mrb[9].mxu0 }
 0x2e1   : > { %v688_v36 = vpop.f32.mrb[10].mxu0 }
 0x2e2   : > { %v1721_v37 = vpop.f32.mrb[11].mxu0  ;;  %v796_v38 = vsel %vm595_vm3, %v790_v34, -inf }
 0x2e3   : > { %v734_v39 = vpop.f32.mrb[0].mxu1  ;;  %797 = vmax.xlane.f32.xlu0 %v796_v38  ;;  %v1898_v37 = vld [vmem:[%s2217_s0] sm:$0xff]   ;;  %v1899_v38 = vld [vmem:[%s2217_s0 + $0x8] sm:$0xff]  }
 0x2e4   : > { %v791_v40 = vmul.f32 0.35355338, %v734_v39  ;;  %v1726_v41 = vpop.f32.mrb[1].mxu1 }
 0x2e5   : > { %v737_v42 = vpop.f32.mrb[2].mxu1 }
 0x2e6   : > { %v1727_v43 = vpop.f32.mrb[3].mxu1  ;;  %v799_v44 = vsel %vm595_vm3, %v791_v40, -inf }
 0x2e7   : > { %800 = vmax.xlane.f32.xlu0 %v799_v44  ;;  %v783_v45 = vpop.f32.mrb[12].mxu0 }
 0x2e8   : > { %v792_v46 = vmul.f32 0.35355338, %v783_v45  ;;  %v1732_v47 = vpop.f32.mrb[13].mxu0 }
 0x2e9   : > { %v786_v48 = vpop.f32.mrb[14].mxu0 }
 0x2ea   : > { %v1733_v49 = vpop.f32.mrb[15].mxu0  ;;  %v802_v50 = vsel %vm595_vm3, %v792_v46, -inf }
 0x2eb   : > { %803 = vmax.xlane.f32.xlu1 %v802_v50 }
 0x2fc   : > { %890 = vrot.lane.b32.xlu1 %v589_v15, %s2047_s22 }
 0x2fd   : > { %841 = vrot.lane.b32.xlu0 %v2270_v12, %s2047_s22 }
 0x2ff   : > { %v795_v51 = vpop.xlane.xlu1 %794 }
 0x300   : > { %v805_v52 = vsub.f32 %v789_v28, %v795_v51 }
 0x302   : > { %v809_v53 = vmul.f32 1.442695, %v805_v52 }
 0x304   : > { %1910 = vpow2.f32 %v809_v53 }
 0x30e   : > { %v1911_v54 = vpop.eup %1910 }
 0x30f   : > { %v817_v55 = vsel %vm595_vm3, %v1911_v54, 0.0 }
 0x31c   : > { %818 = vadd.xlane.f32.xlu0 %v817_v55 }
 0x370   : > { %v798_v56 = vpop.xlane.xlu0 %797 }
 0x371   : > { %v806_v57 = vsub.f32 %v790_v34, %v798_v56 }
 0x373   : > { %v811_v58 = vmul.f32 1.442695, %v806_v57 }
 0x374   : > { %v801_v59 = vpop.xlane.xlu0 %800 }
 0x375   : > { %1912 = vpow2.f32 %v811_v58  ;;  %v807_v60 = vsub.f32 %v791_v40, %v801_v59  ;;  %v1056_v58 = vlaneseq }
 0x377   : > { %v813_v61 = vmul.f32 1.442695, %v807_v60  ;;  %v2345_v59 = vshrl.u32 %v1056_v58, 7 }
 0x378   : > { %v842_v62 = vpop.permute.xlu0 %841  ;;  %v804_v63 = vpop.xlane.xlu1 %803 }
 0x379   : > { %1914 = vpow2.f32 %v813_v61  ;;  %v848_v0 = vsel %vm846_vm4, %v842_v62, 0  ;;  %v808_v1 = vsub.f32 %v792_v46, %v804_v63  ;;  %v1058_v60 = vsub.s32 0, %v2345_v59  ;;  %v2349_v61 = vld [vmem:[%s2238_s23] sm:$0xff] }
 0x37a   : > { %1735 = vmatpush3.bf16.msra.mxu1 %v848_v0 }
 0x37b   : > { %v815_v3 = vmul.f32 1.442695, %v808_v1  ;;  %1746 = vmatprep.subr.bf16.mxu1 %v2041_v2  ;;  %v1059_v62 = vrot.slane %v2349_v61, %v1058_v60 }
 0x37c   : > { %v891_v5 = vpop.permute.xlu1 %890 }
 0x37d   : > { %1916 = vpow2.f32 %v815_v3  ;;  %v896_v6 = vsel %vm846_vm4, %v891_v5, 0 }
 0x37e   : > { %1741 = vmatpush3.bf16.msra.mxu0 %v896_v6 }
 0x37f   : > { %v1913_v7 = vpop.eup %1912  ;;  %1752 = vmatprep.subr.bf16.mxu0 %v2041_v2 }
 0x380   : > { %v820_v8 = vsel %vm595_vm3, %v1913_v7, 0.0 }
 0x381   : > { %821 = vadd.xlane.f32.xlu1 %v820_v8 }
 0x383   : > { %v1915_v9 = vpop.eup %1914 }
 0x384   : > { %v823_v10 = vsel %vm595_vm3, %v1915_v9, 0.0 }
 0x385   : > { %824 = vadd.xlane.f32.xlu0 %v823_v10 }
 0x387   : > { %v1917_v11 = vpop.eup %1916 }
 0x388   : > { %v826_v12 = vsel %vm595_vm3, %v1917_v11, 0.0 }
 0x389   : > { %827 = vadd.xlane.f32.xlu1 %v826_v12 }
 0x39a   : > { %938 = vrot.lane.b32.xlu1 %v2275_v19, %s2047_s22 }
 0x39b   : > { %986 = vrot.lane.b32.xlu0 %v2273_v18, %s2047_s22 }
 0x3a9   : > { %v819_v13 = vpop.xlane.xlu0 %818 }
 0x3aa   : > { %1918 = vrcp.f32 %v819_v13  ;;  %v1900_v13 = vld [vmem:[%s2222_s21] sm:$0xff]  }
 0x3b4   : > { %v1919_v14 = vpop.eup %1918 }
 0x3b5   : > { %v833_v15 = vmul.f32 %v1919_v14, %v1911_v54  ;;  %v1901_v14 = vld [vmem:[%s2222_s21 + $0x8] sm:$0xff]  }
 0x3b7   : > { %v837_v16 = vpack.c.bf16 %v833_v15, %v833_v15 }
 0x3b9   : > { %1737 = vmatmul.mubr.msk.bf16.vlgmr.msra.gmra.mrb[4].mxu1 %vm595_vm3, %v837_v16 }
 0x3ba   : > { %1748 = vmatprep.mubr.msk.bf16.mxu1 %vm2042_vm1, %v2041_v2 }
 0x40e   : > { %v822_v17 = vpop.xlane.xlu1 %821 }
 0x40f   : > { %1920 = vrcp.f32 %v822_v17  ;;  %v1132_v17 = vsub.s32 1, %v2345_v59 }
 0x412   : > { %v825_v20 = vpop.xlane.xlu0 %824 }
 0x413   : > { %1922 = vrcp.f32 %v825_v20  ;;  %v1137_v20 = vsub.s32 2, %v2345_v59 }
 0x416   : > { %v828_v21 = vpop.xlane.xlu1 %827  ;;  %v987_v18 = vpop.permute.xlu0 %986 }
 0x417   : > { %1924 = vrcp.f32 %v828_v21  ;;  %v992_v28 = vsel %vm846_vm4, %v987_v18, 0  ;;  %v1133_v21 = vrot.slane %v2349_v61, %v1132_v17  ;;  %v1372_v17 = vld [vmem:[%s2477_s9 + $0x18] sm:$0xff] (!%p1654_p4) }
 0x419   : > { %v1921_v19 = vpop.eup %1920 }
 0x41a   : > { %v834_v22 = vmul.f32 %v1921_v19, %v1913_v7  ;;  %v939_v23 = vpop.permute.xlu1 %938 }
 0x41b   : > { %v944_v24 = vsel %vm846_vm4, %v939_v23, 0  ;;  %v1138_v23 = vrot.slane %v2349_v61, %v1137_v20  ;;  %v2053_v20 = vmov (!%p1654_p4), 0.0  }
 0x41c   : > { %1747 = vmatpush3.bf16.msra.mxu1 %v944_v24  ;;  %v838_v25 = vpack.c.bf16 %v834_v22, %v834_v22 }
 0x41d   : > { %v1923_v26 = vpop.eup %1922  ;;  %1758 = vmatprep.subr.bf16.mxu1 %v2041_v2 }
 0x41e   : > { %v835_v27 = vmul.f32 %v1923_v26, %v1915_v9  ;;  %1743 = vmatmul.mubr.msk.bf16.vlgmr.msra.gmra.mrb[16].mxu0 %vm595_vm3, %v838_v25  ;;  %v1902_v26 = vld [vmem:[%s2232_s13] sm:$0xff]  }
 0x41f   : > { %1753 = vmatpush3.bf16.msra.mxu0 %v992_v28  ;;  %1754 = vmatprep.mubr.msk.bf16.mxu0 %vm2042_vm1, %v2041_v2  ;;  %v1904_v28 = vld [vmem:[%s2232_s13 + $0x10] sm:$0xff]  }
 0x420   : > { %v839_v29 = vpack.c.bf16 %v835_v27, %v835_v27  ;;  %1766 = vmatprep.subr.bf16.mxu0 %v2041_v2  ;;  %v1903_v27 = vld [vmem:[%s2232_s13 + $0x8] sm:$0xff]  }
 0x421   : > { %v1925_v30 = vpop.eup %1924 }
 0x422   : > { %v836_v31 = vmul.f32 %v1925_v30, %v1917_v11  ;;  %1749 = vmatmul.mubr.msk.bf16.vlgmr.msra.gmra.mrb[8].mxu1 %vm595_vm3, %v839_v29  ;;  %v1905_v29 = vld [vmem:[%s2232_s13 + $0x18] sm:$0xff]   ;;  %v1906_v30 = vld [vmem:[%s2232_s13 + $0x20] sm:$0xff]  }
 0x423   : > { %1762 = vmatprep.mubr.msk.bf16.mxu1 %vm2042_vm1, %v2041_v2  ;;  %1759 = vmatpush3.bf16.msra.mxu1 %v1898_v37 }
 0x424   : > { %v840_v32 = vpack.c.bf16 %v836_v31, %v836_v31  ;;  %1760 = vmatprep.subr.bf16.mxu1 %v2041_v2  ;;  %v1907_v31 = vld [vmem:[%s2232_s13 + $0x28] sm:$0xff]  }
 0x426   : > { %1755 = vmatmul.mubr.msk.bf16.vlgmr.msra.gmra.mrb[20].mxu0 %vm595_vm3, %v840_v32  ;;  %v1908_v32 = vld [vmem:[%s2232_s13 + $0x30] sm:$0xff]  }
 0x427   : > { %1770 = vmatprep.mubr.msk.bf16.mxu0 %vm2042_vm1, %v2041_v2  ;;  %1761 = vmatpush3.bf16.msra.mxu1 %v1899_v38 }
 0x428   : > { %1774 = vmatprep.subr.bf16.mxu1 %v2041_v2  ;;  %1767 = vmatpush3.bf16.msra.mxu0 %v1900_v13 }
 0x429   : > { %1768 = vmatprep.subr.bf16.mxu0 %v2041_v2 }
 0x42c   : > { %1769 = vmatpush3.bf16.msra.mxu0 %v1901_v14  ;;  %v1369_v14 = vld [vmem:[%s2477_s9] sm:$0xff] (!%p1654_p4) }
 0x48c   : > { %v884_v33 = vpop.f32.mrb[4].mxu1 }
 0x48d   : > { %v1738_v34 = vpop.f32.mrb[5].mxu1 }
 0x48e   : > { %v887_v35 = vpop.f32.mrb[6].mxu1  ;;  %v1642_v34 = vld [vmem:[%s486_s19] ss:$0 sm:$0xff] }
 0x48f   : > { %v1739_v36 = vpop.f32.mrb[7].mxu1 }
 0x4f1   : > { %v932_v39 = vpop.f32.mrb[16].mxu0 }
 0x4f2   : > { %1035 = vrot.lane.b32.xlu1 %v932_v39, %s2048_s27  ;;  %v1744_v40 = vpop.f32.mrb[17].mxu0 }
 0x4f3   : > { %v935_v41 = vpop.f32.mrb[18].mxu0 }
 0x4f4   : > { %v1745_v42 = vpop.f32.mrb[19].mxu0 }
 0x4f5   : > { %v980_v43 = vpop.f32.mrb[8].mxu1 }
 0x4f6   : > { %1039 = vrot.lane.b32.xlu0 %v980_v43, %s2049_s18  ;;  %v1750_v44 = vpop.f32.mrb[9].mxu1 }
 0x4f7   : > { %v983_v45 = vpop.f32.mrb[10].mxu1 }
 0x4f8   : > { %v1751_v46 = vpop.f32.mrb[11].mxu1 }
 0x4f9   : > { %v1028_v47 = vpop.f32.mrb[20].mxu0 }
 0x4fa   : > { %1043 = vrot.lane.b32.xlu1 %v1028_v47, %s2050_s25  ;;  %v1756_v48 = vpop.f32.mrb[21].mxu0 }
 0x4fb   : > { %v1031_v49 = vpop.f32.mrb[22].mxu0 }
 0x4fc   : > { %v1757_v50 = vpop.f32.mrb[23].mxu0  ;;  %v1235_v49 = vsub.s32 3, %v2345_v59 }
 0x4fe   : > { %v1236_v50 = vrot.slane %v2349_v61, %v1235_v49 }
 0x564   : > { %v1036_v51 = vpop.permute.xlu1 %1035 }
 0x565   : > { %v1046_v53 = vsel %vm595_vm3, %v884_v33, %v1036_v51  ;;  %v1909_v33 = vld [vmem:[%s2232_s13 + $0x38] sm:$0xff]  }
 0x568   : > { %v1040_v52 = vpop.permute.xlu0 %1039 }
 0x569   : > { %v1048_v54 = vsel %vm1047_vm5, %v1046_v53, %v1040_v52 }
 0x56c   : > { %v1044_v55 = vpop.permute.xlu1 %1043 }
 0x56d   : > { %v1050_v56 = vsel %vm1049_vm6, %v1048_v54, %v1044_v55 }
 0x56e   : > { %v1051_v57 = vpack.c.bf16 %v1050_v56, %v1050_v56 }
 0x570   : > { %1763 = vmatmul.mubr.msk.bf16.vlgmr.msra.gmra.mrb[12].mxu1 %vm534_vm2, %v1051_v57 }
 0x571   : > { %1790 = vmatprep.mubr.msk.bf16.mxu1 %vm2042_vm1, %v2041_v2  ;;  %1775 = vmatpush3.bf16.msra.mxu1 %v1902_v26 }
 0x572   : > { %1776 = vmatprep.subr.bf16.mxu1 %v2041_v2 }
 0x575   : > { %1777 = vmatpush3.bf16.msra.mxu1 %v1903_v27 }
 0x576   : > { %1778 = vmatprep.subr.bf16.mxu1 %v2041_v2 }
 0x579   : > { %1779 = vmatpush3.bf16.msra.mxu1 %v1904_v28 }
 0x57a   : > { %1780 = vmatprep.subr.bf16.mxu1 %v2041_v2 }
 0x57d   : > { %1781 = vmatpush3.bf16.msra.mxu1 %v1905_v29  ;;  %v1373_v29 = vld [vmem:[%s2478_s10] sm:$0x1] (!%p1654_p4) }
 0x57e   : > { %1782 = vmatprep.subr.bf16.mxu1 %v2041_v2 }
 0x581   : > { %1783 = vmatpush3.bf16.msra.mxu1 %v1906_v30 }
 0x582   : > { %1784 = vmatprep.subr.bf16.mxu1 %v2041_v2 }
 0x585   : > { %1785 = vmatpush3.bf16.msra.mxu1 %v1907_v31 }
 0x586   : > { %1786 = vmatprep.subr.bf16.mxu1 %v2041_v2 }
 0x589   : > { %1787 = vmatpush3.bf16.msra.mxu1 %v1908_v32 }
 0x58a   : > { %1788 = vmatprep.subr.bf16.mxu1 %v2041_v2 }
 0x58d   : > { %1789 = vmatpush3.bf16.msra.mxu1 %v1909_v33 }
 0x643   : > { %v1109_v63 = vpop.f32.mrb[12].mxu1 }
 0x644   : > { %v1110_v0 = vadd.f32 %v1109_v63, %v1059_v62  ;;  %v1764_v1 = vpop.f32.mrb[13].mxu1 }
 0x645   : > { %v1112_v3 = vpop.f32.mrb[14].mxu1 }
 0x646   : > { %v1765_v5 = vpop.f32.mrb[15].mxu1  ;;  %v1115_v6 = vadd.f32 %v1110_v0, %v2257_v4 }
 0x648   : > { %v1116_v7 = vsel %vm534_vm2, %v1115_v6, 0.0 }
 0x649   : > { %1117 = vadd.xlane.f32.xlu0 %v1116_v7  ;;  %v1346_v7 = vsub.s32 5, %v2345_v59 }
 0x6d6   : > { %v1118_v8 = vpop.xlane.xlu0 %1117 }
 0x6d7   : > { %v1120_v9 = vmul.f32 0.03125, %v1118_v8 }
 0x6d9   : > { %v1121_v10 = vsub.f32 %v1115_v6, %v1120_v9  ;;  %v1341_v6 = vsub.s32 4, %v2345_v59 }
 0x6db   : > { %v1122_v11 = vmul.f32 %v1121_v10, %v1121_v10  ;;  %v1342_v8 = vrot.slane %v2349_v61, %v1341_v6 }
 0x6dd   : > { %v1123_v12 = vsel %vm534_vm2, %v1122_v11, 0.0 }
 0x6de   : > { %1124 = vadd.xlane.f32.xlu1 %v1123_v12 }
 0x76b   : > { %v1125_v15 = vpop.xlane.xlu1 %1124 }
 0x76c   : > { %v1126_v16 = vmul.f32 0.03125, %v1125_v15  ;;  %v1370_v15 = vld [vmem:[%s2477_s9 + $0x8] sm:$0xff] (!%p1654_p4) }
 0x76e   : > { %v1127_v4 = vadd.f32 1e-12, %v1126_v16  ;;  %v2051_v16 = vmov (!%p1654_p4), 0.0|0.0  }
 0x76f   : > { %1805 = vmatprep.subr.bf16.mxu0 (!%p1654_p4), %v2051_v16 }
 0x770   : > { %1926 = vrsqrt.f32 %v1127_v4  ;;  %v1806_v4 = vpack.c.bf16 (!%p1654_p4), %v1370_v15, %v1369_v14 }
 0x77a   : > { %v1927_v19 = vpop.eup %1926 }
 0x77b   : > { %v1129_v22 = vmul.f32 %v1927_v19, %v1121_v10  ;;  %v1347_v10 = vrot.slane %v2349_v61, %v1346_v7  ;;  %v1371_v61 = vld [vmem:[%s2477_s9 + $0x10] sm:$0xff] (!%p1654_p4)  ;;  %v1357_v19 = vstv (!%p1654_p4), %s1354_s12 }
 0x77c   : > { %vm1358_vm8 = vcmp.eq.s32.totalorder (!%p1654_p4), %v2345_v59, %v1357_v19 }
 0x77d   : > { %v1134_v18 = vmul.f32 %v1133_v21, %v1129_v22  ;;  %v1809_v21 = vpack.c.bf16 (!%p1654_p4), %v1372_v17, %v1371_v61 }
 0x77f   : > { %v1139_v24 = vadd.f32 %v1138_v23, %v1134_v18 }
 0x781   : > { %v1140_v25 = vpack.c.bf16 %v1139_v24, %v1139_v24 }
 0x783   : > { %1771 = vmatmul.mubr.msk.bf16.vlgmr.msra.gmra.mrb[24].mxu0 %vm534_vm2, %v1140_v25 }
 0x784   : > { %1802 = vmatprep.mubr.msk.f32.mxu0 (!%p1654_p4), %vm2052_vm7, %v2053_v20  ;;  %1807 = vmatpush3.bf16.msra.mxu0 (!%p1654_p4), %v1806_v4 }
 0x785   : > { %1808 = vmatprep.subr.bf16.mxu0 (!%p1654_p4), %v2051_v16 }
 0x788   : > { %1810 = vmatpush3.bf16.msra.mxu0 (!%p1654_p4), %v1809_v21 }
 0x856   : > { %v1201_v35 = vpop.f32.mrb[24].mxu0 }
 0x857   : > { %v1202_v36 = vadd.f32 %v1642_v34, %v1201_v35  ;;  %v1772_v37 = vpop.f32.mrb[25].mxu0 }
 0x858   : > { %v1204_v38 = vpop.f32.mrb[26].mxu0 }
 0x859   : > { %v1207_v39 = vmul.f32 %v1202_v36, %v1202_v36  ;;  %v1773_v40 = vpop.f32.mrb[27].mxu0 }
 0x85b   : > { %v1208_v41 = vmul.f32 %v1207_v39, %v1202_v36 }
 0x85d   : > { %v1209_v42 = vmul.f32 0.044715, %v1208_v41 }
 0x85f   : > { %v1210_v43 = vadd.f32 %v1209_v42, %v1202_v36 }
 0x861   : > { %v1211_v44 = vmul.f32 0.7978846, %v1210_v43 }
 0x863   : > { %1928 = vtanh.f32 %v1211_v44 }
 0x86d   : > { %v1929_v45 = vpop.eup %1928 }
 0x86e   : > { %v1213_v46 = vadd.f32 1.0, %v1929_v45 }
 0x870   : > { %v1214_v2 = vmul.f32 0.5, %v1213_v46 }
 0x872   : > { %v1215_v47 = vmul.f32 %v1214_v2, %v1202_v36 }
 0x874   : > { %v1216_v48 = vpack.c.bf16 %v1215_v47, %v1215_v47 }
 0x876   : > { %1791 = vmatmul.mubr.bf16.vlgmr.msra.gmra.mrb[16].mxu1 %v1216_v48 }
 0x949   : > { %v1319_v51 = vpop.f32.mrb[16].mxu1 }
 0x94a   : > { %v1320_v52 = vadd.f32 %v1319_v51, %v1236_v50  ;;  %v1792_v53 = vpop.f32.mrb[17].mxu1 }
 0x94b   : > { %v1322_v54 = vpop.f32.mrb[18].mxu1 }
 0x94c   : > { %v1793_v55 = vpop.f32.mrb[19].mxu1  ;;  %v1325_v56 = vadd.f32 %v1320_v52, %v1139_v24 }
 0x94e   : > { %v1326_v57 = vsel %vm534_vm2, %v1325_v56, 0.0 }
 0x94f   : > { %1327 = vadd.xlane.f32.xlu0 %v1326_v57 }
 0x9dc   : > { %v1328_v58 = vpop.xlane.xlu0 %1327 }
 0x9dd   : > { %v1329_v60 = vmul.f32 0.03125, %v1328_v58 }
 0x9df   : > { %v1330_v62 = vsub.f32 %v1325_v56, %v1329_v60 }
 0x9e1   : > { %v1331_v63 = vmul.f32 %v1330_v62, %v1330_v62 }
 0x9e3   : > { %v1332_v0 = vsel %vm534_vm2, %v1331_v63, 0.0 }
 0x9e4   : > { %1333 = vadd.xlane.f32.xlu0 %v1332_v0 }
 0xa71   : > { %v1334_v1 = vpop.xlane.xlu0 %1333 }
 0xa72   : > { %v1335_v3 = vmul.f32 0.03125, %v1334_v1 }
 0xa74   : > { %v1336_v5 = vadd.f32 1e-12, %v1335_v3 }
 0xa76   : > { %1930 = vrsqrt.f32 %v1336_v5 }
 0xa80   : > { %v1931_v9 = vpop.eup %1930 }
 0xa81   : > { %v1338_v11 = vmul.f32 %v1931_v9, %v1330_v62  ;;  %1353 = sbr.rel (%p1654_p4) target bundleno = 2924 (0xb6c), region = 68 }
 0xa83   : > { %v1343_v12 = vmul.f32 %v1342_v8, %v1338_v11 }
 0xa85   : > { %v1348_v13 = vadd.f32 %v1347_v10, %v1343_v12 }
 0xa87   : > { %1349 = vst.msk [vmem:[%s2254_s2] sm:$0xff] %vm534_vm2, %v1348_v13  ;;  %v1361_v22 = vsel (!%p1654_p4), %vm1358_vm8, %v1348_v13, 0.0 }
 0xa88   : > { %v1362_v23 = vsel %vm534_vm2, %v1361_v22, 0.0 }
 0xa89   : > { %v1363_v18 = vrot.slane %v1362_v23, 4 }
 0xa8b   : > { %v1364_v24 = vadd.f32 %v1363_v18, %v1362_v23 }
 0xa8d   : > { %v1365_v25 = vrot.slane %v1364_v24, 2 }
 0xa8f   : > { %v1366_v26 = vadd.f32 %v1365_v25, %v1364_v24 }
 0xa91   : > { %v1367_v27 = vrot.slane %v1366_v26, 1 }
 0xa93   : > { %v1368_v28 = vadd.f32 %v1367_v27, %v1366_v26 }
 0xa95   : > { %1803 = vmatmul.mubr.msk.f32.vlgmr.msra.gmra.mrb[0].mxu0 %vm534_vm2, %v1368_v28 }
 0xb68   : > { %v1443_v30 = vpop.f32.mrb[0].mxu0 }
 0xb69   : > { %v1444_v31 = vadd.f32 %v1443_v30, %v1373_v29  ;;  %v1804_v32 = vpop.f32.mrb[1].mxu0 }
 0xb6b   : > { %1447 = vst [vmem:[%s2242_s11] sm:$0x1] %v1444_v31 }
 0xb6c PF: > { %s1656_s14 = sshll.u32 %s2022_s30, 4  ;;  %s2511_s27 = sld [smem:[#allocation21_spill]] }
 0xb6d   : > { %s1461_s0 = sshll.u32 %s2242_s11, 4  ;;  %s2513_s21 = sand.u32 1, %s2014_s28   ;;  %s1462_s0 = int_to_ptr.vmem [resolvable:$true] %s1461_s0 }
 0xb6e   : > { %s1449_s26 = scalar_lea.sflag [#allocation6], %s2513_s21  ;;  %s1942_s19 = scalar_lea.vmem %s1462_s0, 16 }
 0xb6f   : > { %p1943_p5 = scmp.ne.s32.totalorder %s1462_s0, %s1942_s19  ;;  %s2054_s13 = smov [#allocation5]  }
 0xb70   : > { %s1946_s23 = sshll.u32 %s2054_s13, 4  ;;  %s1947_s23 = int_to_ptr.vmem [resolvable:$false] %s1946_s23 }
 0xb71   : > { %p1944_p7 = pnand %p1943_p5, %p2179_p6  ;;  %s1948_s1 = scalar_lea.vmem %s1947_s23, 32 }
 0xb72   : > { %s2512_s18 = smov %s2511_s27  ;;  %s2418_s25 = scalar_lea.hbm %s2511_s27, %s1656_s14 }
 0xb73   : > { %p1945_p8 = pneg %p1944_p7  ;;  %p1949_p9 = scmp.lt.s32.totalorder %s1462_s0, %s1947_s23 }
 0xb74   : > { %p1950_p10 = scmp.lt.s32.totalorder %s1948_s1, %s1942_s19 }
 0xb76   : > { %p1951_p12 = por %p1950_p10, %p1949_p9 }
 0xb78   : > { %p1952_p13 = pnand %p1951_p12, %p1945_p8 }
 0xb7a   : > { %1955 = shalt.err (!%p1952_p13)
}
 0xb7b   : > { %s1956_s30 = scalar_lea.hbm %s2418_s25, 16  ;;  %s1960_s2 = scalar_lea.hbm %s2512_s18, 32 }
 0xb7c   : > { %p1957_p0 = scmp.ne.s32.totalorder %s2418_s25, %s1956_s30  ;;  %p1961_p3 = scmp.lt.u32.totalorder %s2418_s25, %s2512_s18 }
 0xb7d   : > { %p1962_p4 = scmp.lt.u32.totalorder %s1960_s2, %s1956_s30  ;;  %p1964_p7 = scmp.lt.u32.totalorder %s1956_s30, %s2418_s25 }
 0xb7e   : > { %p1958_p1 = pnand %p1957_p0, %p2179_p6 }
 0xb7f   : > { %p1963_p5 = por %p1962_p4, %p1961_p3 }
 0xb80   : > { %p1959_p2 = pneg %p1958_p1 }
 0xb81   : > { %p1965_p8 = por %p1964_p7, %p1963_p5 }
 0xb83   : > { %p1966_p9 = pnand %p1965_p8, %p1959_p2 }
 0xb85   : > { %1969 = shalt.err (!%p1966_p9)
}
 0xb86   : > { %1811 = dma.vmem_to_hbm [thread:$0]  (%p2179_p6), %s1462_s0, 16, %s2418_s25, %s1449_s26  }
 0xb87 PF: > { %s2514_s20 = sld [smem:[#allocation13_spill]]  ;;  %s2515_s15 = sld [smem:[#allocation9_spill]] }
 0xb8d   : > { %p1817_p10 = scmp.ge.s32.totalorder %s2514_s20, 2  ;;  %s1473_s17 = sand.u32 1, %s2515_s15  }
 0xb8e   : > { %s1474_s22 = scalar_lea.sflag [#allocation6], %s1473_s17 }
 0xb8f   : > { %p1814_p12 = pnand %p1817_p10, %p2190_p11 }
 0xb91   : > { %2005 = dma.done.wait (!%p1814_p12), %s1474_s22, 16  }
 0xb92   : > { %2007 = vsyncadd (!%p1814_p12), %s1474_s22, 4294967280  ;;  %s28_s0 = sadd.s32 1, %s2514_s20   ;;  %s2517_s21 = sld [smem:[#allocation10_spill]] }
 0xb93   : > { %p25_p13 = scmp.ge.s32.totalorder %s28_s0, 6   ;;  %s2518_s29 = sld [smem:[#allocation17_spill]] }
 0xb94   : > { %s2519_s30 = sld [smem:[#allocation11_spill]]  ;;  %s2520_s12 = sld [smem:[#allocation12_spill]] }
 0xb95   : > { %s2521_s13 = sld [smem:[#allocation14_spill]]  ;;  %s2522_s14 = sld [smem:[#allocation16_spill]] }
 0xb96   : > { %s2523_s27 = smov %s2014_s28  ;;  %27 = sbr.rel (!%p25_p13) target bundleno = 18 (0x12), region = 126 }
 0xb98   : > { %s2524_s28 = smov %s2517_s21 }
 0xb9d   :  { %1478 = vsyncpa [#allocation6], 1 }
 0xb9e   :  { %1480 = vsyncpa [#allocation6 + $0x1], 1 }

</bundles_post_ra>
